<compile_context>
chip_gen: v5e
topology: v5e:2x2
jax: 0.10.0
libtpu: 0.0.40
codegen_flags: <defaults>
</compile_context>

<pallas_src>
import jax
import jax.numpy as jnp
from jax.experimental import pallas as pl
from jax.experimental.pallas import tpu as pltpu


def _stacked_lstm_kernel(x_ref, h0_ref, c0_ref, w_ref, b_ref,
                         h1_ref, c1_ref, feed_ref):
    """One LSTM layer per grid step (grid = (num_layers,), executed sequentially).

    x_ref:   [B, P]          padded module input (consumed at layer 0 only)
    h0_ref:  [1, B, H]       this layer's initial hidden state
    c0_ref:  [1, B, H]       this layer's initial cell state
    w_ref:   [1, P+H, 4H]    bf16 fused (W_ih ; W_hh), pre-transposed, gates (i,f,g,o)
    b_ref:   [1, 1, 4H]      f32 fused bias (b_ih + b_hh)
    h1_ref:  [1, B, H]       this layer's new hidden state (output)
    c1_ref:  [1, B, H]       this layer's new cell state (output)
    feed_ref:[B, P]          f32 VMEM scratch carrying the input feed across layers
    """
    layer = pl.program_id(0)
    H = h0_ref.shape[-1]

    @pl.when(layer == 0)
    def _():
        feed_ref[...] = x_ref[...].astype(feed_ref.dtype)

    h_prev = h0_ref[0]          # [B, H] f32
    c_prev = c0_ref[0]          # [B, H] f32

    # gates = [feed, h] @ W + b : single MXU pass, bf16 operands, f32 accumulation.
    xh = jnp.concatenate([feed_ref[...], h_prev], axis=-1).astype(w_ref.dtype)
    gates = jnp.dot(xh, w_ref[0], preferred_element_type=jnp.float32)
    gates = gates + b_ref[0]    # [1, 4H] broadcast -> [B, 4H]

    i_g = jax.nn.sigmoid(gates[:, 0 * H:1 * H])
    f_g = jax.nn.sigmoid(gates[:, 1 * H:2 * H])
    g_g = jnp.tanh(gates[:, 2 * H:3 * H])
    o_g = jax.nn.sigmoid(gates[:, 3 * H:4 * H])

    c_new = f_g * c_prev + i_g * g_g
    h_new = o_g * jnp.tanh(c_new)

    h1_ref[0] = h_new.astype(h1_ref.dtype)
    c1_ref[0] = c_new.astype(c1_ref.dtype)

    # Input feeding for the next layer (dropout == identity at inference).
    # Columns >= H of feed_ref are never consumed: the matching weight rows are zero
    # for layers > 0, so no re-zeroing is required.
    feed_ref[:, :H] = h_new


def init_stacked_lstm_params(key, num_layers, input_size, rnn_size):
    """nn.LSTMCell-style init: U(-1/sqrt(H), 1/sqrt(H)), fused into stacked kernel layout.

    Returns {"w": [L, P+H, 4H] bf16, "b": [L, 1, 4H] f32} with P = max(input_size, rnn_size).
    Row layout of w[l]: rows [0:in_sz) = W_ih.T, zero-pad to P, rows [P:P+H) = W_hh.T.
    """
    H = rnn_size
    P = max(input_size, rnn_size)
    bound = 1.0 / float(rnn_size) ** 0.5
    w_layers, b_layers = [], []
    in_sz = input_size
    for _ in range(num_layers):
        key, k1, k2, k3, k4 = jax.random.split(key, 5)
        w_ih = jax.random.uniform(k1, (4 * H, in_sz), jnp.float32, -bound, bound)
        w_hh = jax.random.uniform(k2, (4 * H, H), jnp.float32, -bound, bound)
        b_ih = jax.random.uniform(k3, (4 * H,), jnp.float32, -bound, bound)
        b_hh = jax.random.uniform(k4, (4 * H,), jnp.float32, -bound, bound)
        w_top = jnp.zeros((P, 4 * H), jnp.float32).at[:in_sz].set(w_ih.T)
        w_layers.append(jnp.concatenate([w_top, w_hh.T], axis=0))  # [P+H, 4H]
        b_layers.append((b_ih + b_hh).reshape(1, -1))              # [1, 4H]
        in_sz = rnn_size
    return {"w": jnp.stack(w_layers).astype(jnp.bfloat16),
            "b": jnp.stack(b_layers).astype(jnp.float32)}


def stacked_lstm_forward(params, input_feed, hidden):
    """Mirrors StackedLSTM.forward. hidden = (h_0, c_0), each [L, B, H]."""
    w, b = params["w"], params["b"]
    h_0, c_0 = hidden
    L, PH, G4 = w.shape
    H = h_0.shape[-1]
    P = PH - H
    B, I = input_feed.shape

    x = input_feed.astype(jnp.float32)
    if I < P:
        x = jnp.pad(x, ((0, 0), (0, P - I)))

    cost = pl.CostEstimate(
        flops=2 * L * B * PH * G4,
        transcendentals=5 * L * B * H,
        bytes_accessed=L * PH * G4 * 2 + L * G4 * 4 + 4 * L * B * H * 4 + B * P * 4,
    )

    h_1_full, c_1_full = pl.pallas_call(
        _stacked_lstm_kernel,
        out_shape=(jax.ShapeDtypeStruct((L, B, H), jnp.float32),
                   jax.ShapeDtypeStruct((L, B, H), jnp.float32)),
        grid_spec=pltpu.PrefetchScalarGridSpec(
            num_scalar_prefetch=0,
            grid=(L,),
            in_specs=[
                pl.BlockSpec((B, P), lambda l: (0, 0)),        # x (same block every step)
                pl.BlockSpec((1, B, H), lambda l: (l, 0, 0)),  # h_0[l]
                pl.BlockSpec((1, B, H), lambda l: (l, 0, 0)),  # c_0[l]
                pl.BlockSpec((1, PH, G4), lambda l: (l, 0, 0)),  # fused weight, layer l
                pl.BlockSpec((1, 1, G4), lambda l: (l, 0, 0)),   # fused bias, layer l
            ],
            out_specs=(pl.BlockSpec((1, B, H), lambda l: (l, 0, 0)),
                       pl.BlockSpec((1, B, H), lambda l: (l, 0, 0))),
            scratch_shapes=[pltpu.VMEM((B, P), jnp.float32)],
        ),
        compiler_params=pltpu.CompilerParams(
            dimension_semantics=("arbitrary",)),   # layers are sequentially dependent
        cost_estimate=cost,
    )(x, h_0.astype(jnp.float32), c_0.astype(jnp.float32), w, b)

    # Final layer's h is the new input_feed; stacked states exclude the last layer,
    # matching the PyTorch module.
    return h_1_full[-1], (h_1_full[:-1], c_1_full[:-1])


def stacked_lstm_reference(params, input_feed, hidden):
    """Pure-JAX reference with identical math/precision, for correctness checking."""
    w, b = params["w"], params["b"]
    h_0, c_0 = hidden
    L, PH, _ = w.shape
    H = h_0.shape[-1]
    P = PH - H
    feed = input_feed.astype(jnp.float32)
    if feed.shape[1] < P:
        feed = jnp.pad(feed, ((0, 0), (0, P - feed.shape[1])))
    h_1, c_1 = [], []
    out = None
    for i in range(L):
        xh = jnp.concatenate([feed, h_0[i]], axis=-1).astype(w.dtype)
        gates = jnp.dot(xh, w[i], preferred_element_type=jnp.float32) + b[i]
        i_g = jax.nn.sigmoid(gates[:, 0 * H:1 * H])
        f_g = jax.nn.sigmoid(gates[:, 1 * H:2 * H])
        g_g = jnp.tanh(gates[:, 2 * H:3 * H])
        o_g = jax.nn.sigmoid(gates[:, 3 * H:4 * H])
        c_new = f_g * c_0[i] + i_g * g_g
        h_new = o_g * jnp.tanh(c_new)
        out = h_new
        feed = jnp.pad(h_new, ((0, 0), (0, P - H))) if P > H else h_new
        if i + 1 != L:
            h_1.append(h_new)
            c_1.append(c_new)
    return out, (jnp.stack(h_1), jnp.stack(c_1))


if __name__ == "__main__":
    num_layers = 3
    batch = 8
    input_size = 128
    rnn_size = 128

    key = jax.random.PRNGKey(0)
    k_params, k_x, k_h, k_c = jax.random.split(key, 4)

    params = init_stacked_lstm_params(k_params, num_layers, input_size, rnn_size)
    x = jax.random.normal(k_x, (batch, input_size), jnp.float32)
    h_0 = jax.random.normal(k_h, (num_layers, batch, rnn_size), jnp.float32)
    c_0 = jax.random.normal(k_c, (num_layers, batch, rnn_size), jnp.float32)

    fwd = jax.jit(stacked_lstm_forward)
    out, (h_1, c_1) = fwd(params, x, (h_0, c_0))
    jax.block_until_ready((out, h_1, c_1))

    ref_out, (ref_h, ref_c) = stacked_lstm_reference(params, x, (h_0, c_0))
    assert out.shape == (batch, rnn_size)
    assert h_1.shape == (num_layers - 1, batch, rnn_size)
    assert c_1.shape == (num_layers - 1, batch, rnn_size)
    assert jnp.allclose(out, ref_out, atol=1e-3, rtol=1e-3)
    assert jnp.allclose(h_1, ref_h, atol=1e-3, rtol=1e-3)
    assert jnp.allclose(c_1, ref_c, atol=1e-3, rtol=1e-3)

    print("KERNEL_OK")
</pallas_src>

<mosaic_0001>
module attributes {stable_mosaic.version = 11 : i64} {
  func.func @_stacked_lstm_kernel(%arg0: i32, %arg1: memref<8x128xf32, #tpu.memory_space<vmem>>, %arg2: memref<1x8x128xf32, #tpu.memory_space<vmem>>, %arg3: memref<1x8x128xf32, #tpu.memory_space<vmem>>, %arg4: memref<1x256x512xbf16, #tpu.memory_space<vmem>>, %arg5: memref<1x1x512xf32, #tpu.memory_space<vmem>>, %arg6: memref<1x8x128xf32, #tpu.memory_space<vmem>>, %arg7: memref<1x8x128xf32, #tpu.memory_space<vmem>>, %arg8: memref<8x128xf32, #tpu.memory_space<vmem>>) attributes {dimension_semantics = [#tpu.dimension_semantics<arbitrary>], iteration_bounds = array<i64: 3>, scalar_prefetch = 0 : i64, scratch_operands = 1 : i64, tpu.core_type = #tpu.core_type<tc>, window_params = [{pipeline_mode = #tpu.pipeline_mode<synchronous>, transform_indices = @transform_0, window_bounds = array<i64: 8, 128>}, {transform_indices = @transform_1, window_bounds = array<i64: 1, 8, 128>}, {transform_indices = @transform_2, window_bounds = array<i64: 1, 8, 128>}, {transform_indices = @transform_3, window_bounds = array<i64: 1, 256, 512>}, {transform_indices = @transform_4, window_bounds = array<i64: 1, 1, 512>}, {transform_indices = @transform_5, window_bounds = array<i64: 1, 8, 128>}, {transform_indices = @transform_6, window_bounds = array<i64: 1, 8, 128>}]} {
    %c0_i32 = arith.constant 0 : i32
    %0 = arith.cmpi eq, %arg0, %c0_i32 : i32
    %1 = arith.extui %0 : i1 to i32
    %c0_i32_0 = arith.constant 0 : i32
    %2 = arith.cmpi ne, %1, %c0_i32_0 : i32
    scf.if %2 {
      %c0_25 = arith.constant 0 : index
      %c0_26 = arith.constant 0 : index
      %49 = vector.load %arg1[%c0_25, %c0_26] : memref<8x128xf32, #tpu.memory_space<vmem>>, vector<8x128xf32>
      %c0_27 = arith.constant 0 : index
      %c0_28 = arith.constant 0 : index
      %50 = vector.load %arg8[%c0_27, %c0_28] : memref<8x128xf32, #tpu.memory_space<vmem>>, vector<8x128xf32>
      tpu.vector_store %arg8[%c0_27, %c0_28], %49 {strides = array<i32>} : memref<8x128xf32, #tpu.memory_space<vmem>>, vector<8x128xf32>,
    } else {
    }
    %c0 = arith.constant 0 : index
    %c0_1 = arith.constant 0 : index
    %c0_2 = arith.constant 0 : index
    %3 = vector.load %arg2[%c0, %c0_1, %c0_2] : memref<1x8x128xf32, #tpu.memory_space<vmem>>, vector<1x8x128xf32>
    %4 = vector.shape_cast %3 : vector<1x8x128xf32> to vector<8x128xf32>
    %c0_3 = arith.constant 0 : index
    %c0_4 = arith.constant 0 : index
    %c0_5 = arith.constant 0 : index
    %5 = vector.load %arg3[%c0_3, %c0_4, %c0_5] : memref<1x8x128xf32, #tpu.memory_space<vmem>>, vector<1x8x128xf32>
    %6 = vector.shape_cast %5 : vector<1x8x128xf32> to vector<8x128xf32>
    %c0_6 = arith.constant 0 : index
    %c0_7 = arith.constant 0 : index
    %7 = vector.load %arg8[%c0_6, %c0_7] : memref<8x128xf32, #tpu.memory_space<vmem>>, vector<8x128xf32>
    %8 = tpu.concatenate %7, %4 in 1 : vector<8x128xf32>, vector<8x128xf32> -> vector<8x256xf32>
    %9 = arith.truncf %8 : vector<8x256xf32> to vector<8x256xbf16>
    %c0_8 = arith.constant 0 : index
    %c0_9 = arith.constant 0 : index
    %c0_10 = arith.constant 0 : index
    %10 = vector.load %arg4[%c0_8, %c0_9, %c0_10] : memref<1x256x512xbf16, #tpu.memory_space<vmem>>, vector<1x256x512xbf16>
    %11 = vector.shape_cast %10 : vector<1x256x512xbf16> to vector<256x512xbf16>
    %cst = arith.constant dense<0.000000e+00> : vector<8x512xf32>
    %12 = tpu.matmul %9, %11, %cst {dimension_numbers = #tpu.dot_dimension_numbers<[1], [0], [0], [1], [0, 0, 1, 1], [], []>} : vector<8x256xbf16>, vector<256x512xbf16>, vector<8x512xf32> -> vector<8x512xf32>
    %c0_11 = arith.constant 0 : index
    %c0_12 = arith.constant 0 : index
    %c0_13 = arith.constant 0 : index
    %13 = vector.load %arg5[%c0_11, %c0_12, %c0_13] : memref<1x1x512xf32, #tpu.memory_space<vmem>>, vector<1x1x512xf32>
    %14 = vector.shape_cast %13 : vector<1x1x512xf32> to vector<1x512xf32>
    %15 = vector.broadcast %14 : vector<1x512xf32> to vector<8x512xf32>
    %16 = arith.addf %12, %15 : vector<8x512xf32>
    %17 = vector.extract_strided_slice %16 {offsets = [0, 0], sizes = [8, 128], strides = [1, 1]} : vector<8x512xf32> to vector<8x128xf32>
    %18 = arith.negf %17 : vector<8x128xf32>
    %19 = math.exp %18 : vector<8x128xf32>
    %cst_14 = arith.constant 1.000000e+00 : f32
    %20 = vector.broadcast %cst_14 : f32 to vector<8x128xf32>
    %21 = arith.addf %20, %19 : vector<8x128xf32>
    %22 = arith.divf %20, %21 : vector<8x128xf32>
    %23 = vector.extract_strided_slice %16 {offsets = [0, 128], sizes = [8, 128], strides = [1, 1]} : vector<8x512xf32> to vector<8x128xf32>
    %24 = arith.negf %23 : vector<8x128xf32>
    %25 = math.exp %24 : vector<8x128xf32>
    %cst_15 = arith.constant 1.000000e+00 : f32
    %26 = vector.broadcast %cst_15 : f32 to vector<8x128xf32>
    %27 = arith.addf %26, %25 : vector<8x128xf32>
    %28 = arith.divf %26, %27 : vector<8x128xf32>
    %29 = vector.extract_strided_slice %16 {offsets = [0, 256], sizes = [8, 128], strides = [1, 1]} : vector<8x512xf32> to vector<8x128xf32>
    %30 = math.tanh %29 : vector<8x128xf32>
    %31 = vector.extract_strided_slice %16 {offsets = [0, 384], sizes = [8, 128], strides = [1, 1]} : vector<8x512xf32> to vector<8x128xf32>
    %32 = arith.negf %31 : vector<8x128xf32>
    %33 = math.exp %32 : vector<8x128xf32>
    %cst_16 = arith.constant 1.000000e+00 : f32
    %34 = vector.broadcast %cst_16 : f32 to vector<8x128xf32>
    %35 = arith.addf %34, %33 : vector<8x128xf32>
    %36 = arith.divf %34, %35 : vector<8x128xf32>
    %37 = arith.mulf %28, %6 : vector<8x128xf32>
    %38 = arith.mulf %22, %30 : vector<8x128xf32>
    %39 = arith.addf %37, %38 : vector<8x128xf32>
    %40 = math.tanh %39 : vector<8x128xf32>
    %41 = arith.mulf %36, %40 : vector<8x128xf32>
    %c0_17 = arith.constant 0 : index
    %c0_18 = arith.constant 0 : index
    %c0_19 = arith.constant 0 : index
    %42 = vector.load %arg6[%c0_17, %c0_18, %c0_19] : memref<1x8x128xf32, #tpu.memory_space<vmem>>, vector<1x8x128xf32>
    %43 = vector.shape_cast %42 : vector<1x8x128xf32> to vector<8x128xf32>
    %44 = vector.shape_cast %41 : vector<8x128xf32> to vector<1x8x128xf32>
    tpu.vector_store %arg6[%c0_17, %c0_18, %c0_19], %44 {strides = array<i32>} : memref<1x8x128xf32, #tpu.memory_space<vmem>>, vector<1x8x128xf32>,
    %c0_20 = arith.constant 0 : index
    %c0_21 = arith.constant 0 : index
    %c0_22 = arith.constant 0 : index
    %45 = vector.load %arg7[%c0_20, %c0_21, %c0_22] : memref<1x8x128xf32, #tpu.memory_space<vmem>>, vector<1x8x128xf32>
    %46 = vector.shape_cast %45 : vector<1x8x128xf32> to vector<8x128xf32>
    %47 = vector.shape_cast %39 : vector<8x128xf32> to vector<1x8x128xf32>
    tpu.vector_store %arg7[%c0_20, %c0_21, %c0_22], %47 {strides = array<i32>} : memref<1x8x128xf32, #tpu.memory_space<vmem>>, vector<1x8x128xf32>,
    %c0_23 = arith.constant 0 : index
    %c0_24 = arith.constant 0 : index
    %48 = vector.load %arg8[%c0_23, %c0_24] : memref<8x128xf32, #tpu.memory_space<vmem>>, vector<8x128xf32>
    tpu.vector_store %arg8[%c0_23, %c0_24], %41 {strides = array<i32>} : memref<8x128xf32, #tpu.memory_space<vmem>>, vector<8x128xf32>,
    return
  }
  func.func @transform_0(%arg0: i32) -> (i32, i32) {
    %c0_i32 = arith.constant 0 : i32
    %c0_i32_0 = arith.constant 0 : i32
    %c0_i32_1 = arith.constant 0 : i32
    return %c0_i32, %c0_i32_0 : i32, i32
  }
  func.func @transform_1(%arg0: i32) -> (i32, i32, i32) {
    %c0_i32 = arith.constant 0 : i32
    %c0_i32_0 = arith.constant 0 : i32
    %c0_i32_1 = arith.constant 0 : i32
    return %arg0, %c0_i32, %c0_i32_0 : i32, i32, i32
  }
  func.func @transform_2(%arg0: i32) -> (i32, i32, i32) {
    %c0_i32 = arith.constant 0 : i32
    %c0_i32_0 = arith.constant 0 : i32
    %c0_i32_1 = arith.constant 0 : i32
    return %arg0, %c0_i32, %c0_i32_0 : i32, i32, i32
  }
  func.func @transform_3(%arg0: i32) -> (i32, i32, i32) {
    %c0_i32 = arith.constant 0 : i32
    %c0_i32_0 = arith.constant 0 : i32
    %c0_i32_1 = arith.constant 0 : i32
    return %arg0, %c0_i32, %c0_i32_0 : i32, i32, i32
  }
  func.func @transform_4(%arg0: i32) -> (i32, i32, i32) {
    %c0_i32 = arith.constant 0 : i32
    %c0_i32_0 = arith.constant 0 : i32
    %c0_i32_1 = arith.constant 0 : i32
    return %arg0, %c0_i32, %c0_i32_0 : i32, i32, i32
  }
  func.func @transform_5(%arg0: i32) -> (i32, i32, i32) {
    %c0_i32 = arith.constant 0 : i32
    %c0_i32_0 = arith.constant 0 : i32
    %c0_i32_1 = arith.constant 0 : i32
    return %arg0, %c0_i32, %c0_i32_0 : i32, i32, i32
  }
  func.func @transform_6(%arg0: i32) -> (i32, i32, i32) {
    %c0_i32 = arith.constant 0 : i32
    %c0_i32_0 = arith.constant 0 : i32
    %c0_i32_1 = arith.constant 0 : i32
    return %arg0, %c0_i32, %c0_i32_0 : i32, i32, i32
  }
}

</mosaic_0001>

<bundles_post_ra>
// kernel: stacked_lstm_forward.1
= control target key start
LH: loop header
LB: loop body
LE: loop exit
PB: predicated region body
PF: predicated region fallthrough
CT: control target
= control target key end

     0   :  { %s2178_s0 = inlined_call_operand.hbm [shape: f32[8,128], index: 0, kind: input, shape index: {}]   ;;  %s2179_s1 = inlined_call_operand.hbm [shape: f32[3,8,128], index: 1, kind: input, shape index: {}]   ;;  %s2180_s2 = inlined_call_operand.hbm [shape: f32[3,8,128], index: 2, kind: input, shape index: {}]   ;;  %s2181_s3 = inlined_call_operand.hbm [shape: bf16[3,256,512], index: 3, kind: input, shape index: {}]   ;;  %s2182_s4 = inlined_call_operand.hbm [shape: f32[3,1,512], index: 4, kind: input, shape index: {}]   ;;  %s2183_s5 = inlined_call_operand.vmem [shape: f32[3,8,128], index: 5, kind: output, shape index: {0}]   ;;  %s2184_s6 = inlined_call_operand.vmem [shape: f32[3,8,128], index: 6, kind: output, shape index: {1}]  }
   0x1   :  { %2187 = sst [smem:[#allocation14_spill]] %s2178_s0 }
   0x2   :  { %2188 = sst [smem:[#allocation15_spill]] %s2179_s1 }
   0x3   :  { %12 = vsyncpa [#allocation4], 0 }
   0x4   :  { %13 = vsyncpa [#allocation6], 0 }
   0x5   :  { %15 = vsyncpa [#allocation6 + $0x1], 0 }
   0x6   :  { %16 = vsyncpa [#allocation9], 0 }
   0x7   :  { %18 = vsyncpa [#allocation9 + $0x1], 0  ;;  %s1818_s21 = smov 0   ;;  %s1820_s22 = smov 0  }
   0x8   :  { %s1822_s23 = smov 0   ;;  %s1824_s24 = smov 0  }
   0x9 LB: > { %s1839_s25 = sadd.s32 1, %s1778_s24   ;;  %s52_s26 = sadd.s32 1, %s1774_s23  ;;  %s1778_s24 = sphi %s1824_s24, %s2203_s24   ;;  %s1774_s23 = sphi %s1822_s23, %s2202_s23   ;;  %s1770_s22 = sphi %s1820_s22, %s2201_s22   ;;  %s1766_s21 = sphi %s1818_s21, %s2200_s21  }
   0xa   : > { %s49_s27 = ssub.s32 %s1778_s24, %s1839_s25  ;;  %p59_p0 = scmp.ne.s32.totalorder %s1774_s23, %s1770_s22 }
   0xb   : > { %p50_p1 = scmp.eq.s32.totalorder %s49_s27, 0  ;;  %p60_p2 = scmp.eq.s32.totalorder %s1778_s24, 0 }
   0xc   : > { %p1533_p3 = scmp.lt.s32.totalorder %s1778_s24, 3  ;;  %s2186_s29 = sand.u32 1, %s1778_s24  }
   0xd   : > { %s1849_s28 = scalar_select %p50_p1, %s1774_s23, %s52_s26  }
   0xe   : > { %p61_p4 = por %p60_p2, %p59_p0  ;;  %s1853_s30 = sand.u32 1, %s1774_s23  }
   0xf   : > { %s2185_s7 = sshll.u32 %s1853_s30, 3  ;;  %s1160_s8 = sshll.u32 %s1778_s24, 3 }
  0x10   : > { %s2189_s1 = sld [smem:[#allocation15_spill]]  ;;  %s235_s13 = scalar_lea.vmem [#allocation5], %s2185_s7 }
  0x11   : > { %s243_s14 = sshll.u32 %s235_s13, 4  ;;  %p1864_p5 = pnand %p1533_p3, %p61_p4  ;;  %s244_s14 = int_to_ptr.vmem [resolvable:$true] %s243_s14 }
  0x12   : > { %s1871_s18 = scalar_lea.hbm %s2180_s2, %s1160_s8  ;;  %s1163_s19 = sshll.u32 %s1853_s30, 9 }
  0x13   : > { %s1876_s20 = scalar_lea.sflag [#allocation6], %s2186_s29  ;;  %p1590_p7 = pneg %p1864_p5 }
  0x16   : > { %s239_s11 = scalar_lea.hbm %s2189_s1, %s1160_s8 }
  0x17   : > { %s241_s12 = sshll.u32 %s239_s11, 4  ;;  %s1593_s11 = scalar_lea.hbm %s2189_s1, 24  ;;  %s242_s12 = int_to_ptr.hbm [resolvable:$true] %s241_s12 }
  0x18   : > { %s1586_s26 = sshra.s32 %s242_s12, 4  ;;  %s1587_s26 = int_to_ptr.hbm [resolvable:$true] %s1586_s26 }
  0x19   : > { %s1588_s27 = scalar_lea.hbm %s1587_s26, 8  ;;  %p1594_p10 = scmp.lt.s32.totalorder %s1587_s26, %s2189_s1 }
  0x1a   : > { %p1589_p6 = scmp.ne.s32.totalorder %s1587_s26, %s1588_s27  ;;  %p1595_p11 = scmp.lt.s32.totalorder %s1593_s11, %s1588_s27 }
  0x1c   : > { %p1591_p8 = pnand %p1590_p7, %p1589_p6  ;;  %p1596_p12 = por %p1595_p11, %p1594_p10 }
  0x1e   : > { %p1592_p9 = pneg %p1591_p8 }
  0x20   : > { %p1597_p13 = pnand %p1596_p12, %p1592_p9 }
  0x22   : > { %1600 = shalt.err (!%p1597_p13)
}
  0x23   : > { %1522 = dma.hbm_to_vmem [thread:$0]  (!%p1864_p5), %s242_s12, 128, %s244_s14, %s1876_s20  }
  0x24   : > { %s1438_s16 = sshll.u32 %s1778_s24, 9  ;;  %s273_s10 = scalar_lea.vmem [#allocation8], %s1163_s19 }
  0x25   : > { %s278_s9 = scalar_lea.hbm %s2181_s3, %s1438_s16  ;;  %s281_s29 = sshll.u32 %s273_s10, 4  ;;  %s282_s29 = int_to_ptr.vmem [resolvable:$true] %s281_s29 }
  0x26   : > { %s279_s8 = sshll.u32 %s278_s9, 4  ;;  %s2191_s26 = sand.u32 1, %s1778_s24   ;;  %s280_s8 = int_to_ptr.hbm [resolvable:$true] %s279_s8 }
  0x27   : > { %s1898_s27 = scalar_lea.sflag [#allocation9], %s2191_s26  ;;  %s1616_s11 = sshra.s32 %s280_s8, 4  ;;  %s1617_s11 = int_to_ptr.hbm [resolvable:$true] %s1616_s11 }
  0x28   : > { %s1618_s13 = scalar_lea.hbm %s1617_s11, 512  ;;  %s1623_s7 = scalar_lea.hbm %s2181_s3, 1536 }
  0x29   : > { %p1619_p0 = scmp.ne.s32.totalorder %s1617_s11, %s1618_s13  ;;  %p1624_p3 = scmp.lt.s32.totalorder %s1617_s11, %s2181_s3 }
  0x2a   : > { %p1625_p4 = scmp.lt.s32.totalorder %s1623_s7, %s1618_s13 }
  0x2b   : > { %p1621_p1 = pnand %p1619_p0, %p1590_p7 }
  0x2c   : > { %p1626_p6 = por %p1625_p4, %p1624_p3 }
  0x2d   : > { %p1622_p2 = pneg %p1621_p1 }
  0x2f   : > { %p1627_p8 = pnand %p1626_p6, %p1622_p2 }
  0x31   : > { %1630 = shalt.err (!%p1627_p8)
}
  0x32   : > { %s1780_s17 = smov 256   ;;  %s1781_s9 = smov 16  }
  0x33   : > { %1528 = dma.hbm_to_vmem [thread:$0]  (!%p1864_p5), %s280_s8, 8192, %s282_s29, %s1898_s27, %s1780_s17, %s1780_s17, %s1781_s9  }
  0x34   : > { %s1913_s10 = sadd.s32 4294967295, %s1778_s24   ;;  %p65_p9 = scmp.ne.s32.totalorder %s1770_s22, %s1766_s21 }
  0x35   : > { %p66_p10 = scmp.eq.s32.totalorder %s1913_s10, 0  ;;  %p1156_p11 = scmp.ge.s32.totalorder %s1778_s24, 1 }
  0x36   : > { %p206_p12 = scmp.lt.s32.totalorder %s1778_s24, 4  ;;  %p1157_p0 = scmp.ne.s32.totalorder %s1913_s10, 0 }
  0x37   : > { %p1922_p13 = por %p66_p10, %p65_p9  ;;  %s2194_s0 = sld [smem:[#allocation14_spill]] }
  0x38   : > { %p1927_p1 = pnand %p1156_p11, %p206_p12  ;;  %s1782_s13 = smov [#allocation3]  }
  0x39   : > { %s220_s12 = sshll.u32 %s1782_s13, 4  ;;  %s260_s14 = sshll.u32 %s1871_s18, 4  ;;  %s221_s12 = int_to_ptr.vmem [resolvable:$true] %s220_s12  ;;  %s261_s14 = int_to_ptr.hbm [resolvable:$true] %s260_s14 }
  0x3a   : > { %p1515_p2 = pneg %p1927_p1  ;;  %s2195_s7 = sshll.u32 %s1853_s30, 3 }
  0x3b   : > { %s254_s19 = scalar_lea.vmem [#allocation7], %s2195_s7  ;;  %s1166_s17 = sshll.u32 %s1853_s30, 2 }
  0x3c   : > { %p1516_p3 = pnand %p1515_p2, %p66_p10  ;;  %s262_s16 = sshll.u32 %s254_s19, 4  ;;  %s263_s16 = int_to_ptr.vmem [resolvable:$true] %s262_s16 }
  0x3d   : > { %s218_s21 = sshll.u32 %s2194_s0, 4  ;;  %s1676_s9 = sshra.s32 %s261_s14, 4  ;;  %s219_s21 = int_to_ptr.hbm [resolvable:$true] %s218_s21  ;;  %s1677_s9 = int_to_ptr.hbm [resolvable:$true] %s1676_s9 }
  0x3e   : > { %1518 = dma.hbm_to_vmem [thread:$0]  (!%p1516_p3), %s219_s21, 128, %s221_s12, [#allocation4]  }
  0x3f   : > { %s1678_s8 = scalar_lea.hbm %s1677_s9, 8  ;;  %s1683_s18 = scalar_lea.hbm %s2180_s2, 24 }
  0x40   : > { %p1679_p4 = scmp.ne.s32.totalorder %s1677_s9, %s1678_s8  ;;  %p1684_p9 = scmp.lt.s32.totalorder %s1677_s9, %s2180_s2 }
  0x41   : > { %p1685_p11 = scmp.lt.s32.totalorder %s1683_s18, %s1678_s8 }
  0x42   : > { %p1681_p6 = pnand %p1679_p4, %p1590_p7 }
  0x43   : > { %p1686_p12 = por %p1685_p11, %p1684_p9 }
  0x44   : > { %p1682_p8 = pneg %p1681_p6 }
  0x46   : > { %p1687_p2 = pnand %p1686_p12, %p1682_p8 }
  0x48   : > { %1690 = shalt.err (!%p1687_p2)
}
  0x49   : > { %1525 = dma.hbm_to_vmem [thread:$0]  (!%p1864_p5), %s261_s14, 128, %s263_s16, %s1876_s20  }
  0x4a   : > { %s1167_s30 = sshll.u32 %s1778_s24, 2  ;;  %s295_s19 = scalar_lea.vmem [#allocation10], %s1166_s17 }
  0x4b   : > { %s299_s7 = scalar_lea.hbm %s2182_s4, %s1167_s30  ;;  %s303_s11 = sshll.u32 %s295_s19, 4  ;;  %s304_s11 = int_to_ptr.vmem [resolvable:$true] %s303_s11 }
  0x4c   : > { %s301_s13 = sshll.u32 %s299_s7, 4  ;;  %s1713_s24 = scalar_lea.hbm %s2182_s4, 12  ;;  %s302_s13 = int_to_ptr.hbm [resolvable:$true] %s301_s13 }
  0x4d   : > { %s1706_s0 = sshra.s32 %s302_s13, 4  ;;  %s1707_s0 = int_to_ptr.hbm [resolvable:$true] %s1706_s0 }
  0x4e   : > { %s1708_s1 = scalar_lea.hbm %s1707_s0, 4  ;;  %p1714_p8 = scmp.lt.s32.totalorder %s1707_s0, %s2182_s4 }
  0x4f   : > { %p1709_p3 = scmp.ne.s32.totalorder %s1707_s0, %s1708_s1  ;;  %p1715_p9 = scmp.lt.s32.totalorder %s1713_s24, %s1708_s1 }
  0x51   : > { %p1711_p4 = pnand %p1709_p3, %p1590_p7  ;;  %p1716_p11 = por %p1715_p9, %p1714_p8 }
  0x53   : > { %p1712_p6 = pneg %p1711_p4 }
  0x55   : > { %p1717_p12 = pnand %p1716_p11, %p1712_p6 }
  0x57   : > { %1720 = shalt.err (!%p1717_p12)
}
  0x58   : > { %1531 = dma.hbm_to_vmem [thread:$0]  (!%p1864_p5), %s302_s13, 64, %s304_s11, %s1898_s27  }
  0x59   : > { %312 = sbr.rel (%p1927_p1) target bundleno = 345 (0x159), region = 40 }
  0x5e   : > { %1753 = dma.done.wait (%p66_p10), [#allocation4], 128  }
  0x5f   : > { %1755 = vsyncadd (%p66_p10), [#allocation4], 4294967168  ;;  %s319_s17 = sand.u32 1, %s1913_s10   ;;  %s321_s8 = sand.u32 1, %s1770_s22  }
  0x60   : > { %s1170_s18 = sshll.u32 %s321_s8, 3  ;;  %s320_s30 = scalar_lea.sflag [#allocation6], %s319_s17 }
  0x61   : > { %s1978_s21 = scalar_lea.vmem [#allocation5], %s1170_s18 }
  0x62   : > { %1757 = dma.done.wait (%p1922_p13), %s320_s30, 256  }
  0x63   : > { %1759 = vsyncadd (%p1922_p13), %s320_s30, 4294967040  ;;  %s1172_s15 = sshll.u32 %s321_s8, 9  ;;  %s1984_s27 = scalar_lea.vmem [#allocation7], %s1170_s18 }
  0x64   : > { %s340_s29 = scalar_lea.sflag [#allocation9], %s319_s17  ;;  %s1986_s12 = scalar_lea.vmem [#allocation8], %s1172_s15 }
  0x65   : > { %1761 = dma.done.wait (%p1922_p13), %s340_s29, 8256  }
  0x66   : > { %1763 = vsyncadd (%p1922_p13), %s340_s29, 4294959040  ;;  %s1173_s7 = sshll.u32 %s321_s8, 2  ;;  %p401_p5 = scmp.lt.s32.totalorder %s1913_s10, 2 }
  0x67   : > { %s2004_s14 = scalar_lea.vmem [#allocation10], %s1173_s7  ;;  %412 = sbr.rel (%p1157_p0) target bundleno = 110 (0x6e), region = 64 }
  0x68   : > { %s402_s19 = scalar_select %p401_p5, %s1913_s10, 2 }
  0x6a   : > { %s1174_s11 = sshll.u32 %s402_s19, 3 }
  0x6b   : > { %s1997_s1 = scalar_lea.vmem %s2183_s5, %s1174_s11  ;;  %s2002_s24 = scalar_lea.vmem %s2184_s6, %s1174_s11 }
  0x6c   : > { %v413_v0 = vld [vmem:[#allocation3] sm:$0xff] }
  0x6d   : > { %414 = vst [vmem:[#allocation2] sm:$0xff] %v413_v0 }
  0x6e PF: > { %v1291_v1 = vld [vmem:[%s1986_s12 + $0xe0] sm:$0xf]  ;;  %v1469_v2 = vld [vmem:[%s1986_s12 + $0xec] sm:$0xf0]  ;;  %v1467_v3 = vld [vmem:[%s1986_s12 + $0xe4] sm:$0xf] }
  0x6f   : > { %v1292_v4 = vor.u32 %v1469_v2, %v1291_v1  ;;  %v1293_v5 = vld [vmem:[%s1986_s12 + $0xf0] sm:$0xf0]  ;;  %v1499_v6 = vld [vmem:[%s1986_s12 + $0x1e4] sm:$0xf]  ;;  %v1419_v10 = vld [vmem:[%s1986_s12 + $0x1e0] sm:$0xf] }
  0x70   : > { %v1421_v7 = vld [vmem:[%s1986_s12 + $0x1f0] sm:$0xf0]  ;;  %v1296_v8 = vor.u32 %v1467_v3, %v1293_v5  ;;  %v1501_v11 = vld [vmem:[%s1986_s12 + $0x1ec] sm:$0xf0]  ;;  %v1275_v12 = vld [vmem:[%s1986_s12 + $0xc0] sm:$0xf] }
  0x71   : > { %v1424_v9 = vor.u32 %v1499_v6, %v1421_v7  ;;  %814 = vmatpush.bf16.msra.mxu0 %v1292_v4  ;;  %v1420_v13 = vor.u32 %v1501_v11, %v1419_v10  ;;  %v1465_v14 = vld [vmem:[%s1986_s12 + $0xcc] sm:$0xf0]  ;;  %v1463_v15 = vld [vmem:[%s1986_s12 + $0xc4] sm:$0xf]  ;;  %v1277_v16 = vld [vmem:[%s1986_s12 + $0xd0] sm:$0xf0] }
  0x72   : > { %840 = vmatpush.bf16.msra.mxu2 %v1296_v8  ;;  %v1276_v17 = vor.u32 %v1465_v14, %v1275_v12  ;;  %v1280_v18 = vor.u32 %v1463_v15, %v1277_v16  ;;  %v1495_v19 = vld [vmem:[%s1986_s12 + $0x1c4] sm:$0xf]  ;;  %v1405_v20 = vld [vmem:[%s1986_s12 + $0x1d0] sm:$0xf0]  ;;  %v1403_v21 = vld [vmem:[%s1986_s12 + $0x1c0] sm:$0xf] }
  0x73   : > { %853 = vmatpush.bf16.msra.mxu3 %v1424_v9  ;;  %827 = vmatpush.bf16.msra.mxu1 %v1420_v13  ;;  %v1408_v22 = vor.u32 %v1495_v19, %v1405_v20  ;;  %v1497_v23 = vld [vmem:[%s1986_s12 + $0x1cc] sm:$0xf0]  ;;  %v1259_v24 = vld [vmem:[%s1986_s12 + $0xa0] sm:$0xf]  ;;  %v1459_v27 = vld [vmem:[%s1986_s12 + $0xa4] sm:$0xf] }
  0x74   : > { %v1461_v25 = vld [vmem:[%s1986_s12 + $0xac] sm:$0xf0]  ;;  %v1404_v26 = vor.u32 %v1497_v23, %v1403_v21  ;;  %v1261_v28 = vld [vmem:[%s1986_s12 + $0xb0] sm:$0xf0]  ;;  %v1491_v29 = vld [vmem:[%s1986_s12 + $0x1a4] sm:$0xf] }
  0x75   : > { %815 = vmatpush.bf16.msra.mxu0 %v1276_v17  ;;  %v1260_v30 = vor.u32 %v1461_v25, %v1259_v24  ;;  %v1389_v31 = vld [vmem:[%s1986_s12 + $0x1b0] sm:$0xf0]  ;;  %v1387_v32 = vld [vmem:[%s1986_s12 + $0x1a0] sm:$0xf]  ;;  %v1493_v33 = vld [vmem:[%s1986_s12 + $0x1ac] sm:$0xf0]  ;;  %v1264_v34 = vor.u32 %v1459_v27, %v1261_v28 }
  0x76   : > { %841 = vmatpush.bf16.msra.mxu2 %v1280_v18  ;;  %v1392_v35 = vor.u32 %v1491_v29, %v1389_v31  ;;  %v1243_v36 = vld [vmem:[%s1986_s12 + $0x80] sm:$0xf]  ;;  %v1457_v37 = vld [vmem:[%s1986_s12 + $0x8c] sm:$0xf0]  ;;  %v1455_v38 = vld [vmem:[%s1986_s12 + $0x84] sm:$0xf]  ;;  %v1388_v39 = vor.u32 %v1493_v33, %v1387_v32 }
  0x77   : > { %854 = vmatpush.bf16.msra.mxu3 %v1408_v22  ;;  %828 = vmatpush.bf16.msra.mxu1 %v1404_v26  ;;  %v1245_v40 = vld [vmem:[%s1986_s12 + $0x90] sm:$0xf0]  ;;  %v1487_v41 = vld [vmem:[%s1986_s12 + $0x184] sm:$0xf]  ;;  %v1371_v43 = vld [vmem:[%s1986_s12 + $0x180] sm:$0xf]  ;;  %v1244_v45 = vor.u32 %v1457_v37, %v1243_v36 }
  0x78   : > { %v1373_v42 = vld [vmem:[%s1986_s12 + $0x190] sm:$0xf0]  ;;  %v1489_v44 = vld [vmem:[%s1986_s12 + $0x18c] sm:$0xf0]  ;;  %v1248_v46 = vor.u32 %v1455_v38, %v1245_v40  ;;  %v1227_v48 = vld [vmem:[%s1986_s12 + $0x60] sm:$0xf] }
  0x79   : > { %816 = vmatpush.bf16.msra.mxu0 %v1260_v30  ;;  %v1376_v47 = vor.u32 %v1487_v41, %v1373_v42  ;;  %v1453_v49 = vld [vmem:[%s1986_s12 + $0x6c] sm:$0xf0]  ;;  %v1451_v50 = vld [vmem:[%s1986_s12 + $0x64] sm:$0xf]  ;;  %v1372_v51 = vor.u32 %v1489_v44, %v1371_v43  ;;  %v1229_v52 = vld [vmem:[%s1986_s12 + $0x70] sm:$0xf0] }
  0x7a   : > { %842 = vmatpush.bf16.msra.mxu2 %v1264_v34  ;;  %v1483_v53 = vld [vmem:[%s1986_s12 + $0x164] sm:$0xf]  ;;  %v1357_v54 = vld [vmem:[%s1986_s12 + $0x170] sm:$0xf0]  ;;  %v1355_v55 = vld [vmem:[%s1986_s12 + $0x160] sm:$0xf]  ;;  %v1228_v57 = vor.u32 %v1453_v49, %v1227_v48  ;;  %v1232_v58 = vor.u32 %v1451_v50, %v1229_v52 }
  0x7b   : > { %855 = vmatpush.bf16.msra.mxu3 %v1392_v35  ;;  %829 = vmatpush.bf16.msra.mxu1 %v1388_v39  ;;  %v1485_v56 = vld [vmem:[%s1986_s12 + $0x16c] sm:$0xf0]  ;;  %v1360_v59 = vor.u32 %v1483_v53, %v1357_v54  ;;  %v1211_v60 = vld [vmem:[%s1986_s12 + $0x40] sm:$0xf]  ;;  %v1447_v62 = vld [vmem:[%s1986_s12 + $0x44] sm:$0xf] }
  0x7c   : > { %v1449_v61 = vld [vmem:[%s1986_s12 + $0x4c] sm:$0xf0]  ;;  %v1356_v63 = vor.u32 %v1485_v56, %v1355_v55  ;;  %v1213_v0 = vld [vmem:[%s1986_s12 + $0x50] sm:$0xf0]  ;;  %v1479_v1 = vld [vmem:[%s1986_s12 + $0x144] sm:$0xf] }
  0x7d   : > { %817 = vmatpush.bf16.msra.mxu0 %v1244_v45  ;;  %v1341_v2 = vld [vmem:[%s1986_s12 + $0x150] sm:$0xf0]  ;;  %v1339_v3 = vld [vmem:[%s1986_s12 + $0x140] sm:$0xf]  ;;  %v1481_v4 = vld [vmem:[%s1986_s12 + $0x14c] sm:$0xf0]  ;;  %v1212_v5 = vor.u32 %v1449_v61, %v1211_v60  ;;  %v1216_v6 = vor.u32 %v1447_v62, %v1213_v0 }
  0x7e   : > { %843 = vmatpush.bf16.msra.mxu2 %v1248_v46  ;;  %v1344_v7 = vor.u32 %v1479_v1, %v1341_v2  ;;  %v1195_v8 = vld [vmem:[%s1986_s12 + $0x20] sm:$0xf]  ;;  %v1445_v9 = vld [vmem:[%s1986_s12 + $0x2c] sm:$0xf0]  ;;  %v1443_v10 = vld [vmem:[%s1986_s12 + $0x24] sm:$0xf]  ;;  %v1340_v11 = vor.u32 %v1481_v4, %v1339_v3 }
  0x7f   : > { %856 = vmatpush.bf16.msra.mxu3 %v1376_v47  ;;  %830 = vmatpush.bf16.msra.mxu1 %v1372_v51  ;;  %v1197_v12 = vld [vmem:[%s1986_s12 + $0x30] sm:$0xf0]  ;;  %v1475_v13 = vld [vmem:[%s1986_s12 + $0x124] sm:$0xf]  ;;  %v1323_v15 = vld [vmem:[%s1986_s12 + $0x120] sm:$0xf]  ;;  %v1196_v17 = vor.u32 %v1445_v9, %v1195_v8 }
  0x80   : > { %v1325_v14 = vld [vmem:[%s1986_s12 + $0x130] sm:$0xf0]  ;;  %v1477_v16 = vld [vmem:[%s1986_s12 + $0x12c] sm:$0xf0]  ;;  %v1179_v18 = vld [vmem:[%s1986_s12] sm:$0xf]  ;;  %v1200_v20 = vor.u32 %v1443_v10, %v1197_v12 }
  0x81   : > { %818 = vmatpush.bf16.msra.mxu0 %v1228_v57  ;;  %v1441_v19 = vld [vmem:[%s1986_s12 + $0xc] sm:$0xf0]  ;;  %v1328_v21 = vor.u32 %v1475_v13, %v1325_v14  ;;  %v1439_v22 = vld [vmem:[%s1986_s12 + $0x4] sm:$0xf]  ;;  %v1181_v23 = vld [vmem:[%s1986_s12 + $0x10] sm:$0xf0]  ;;  %v1324_v25 = vor.u32 %v1477_v16, %v1323_v15 }
  0x82   : > { %844 = vmatpush.bf16.msra.mxu2 %v1232_v58  ;;  %v1471_v24 = vld [vmem:[%s1986_s12 + $0x104] sm:$0xf]  ;;  %v1309_v26 = vld [vmem:[%s1986_s12 + $0x110] sm:$0xf0]  ;;  %v1299_v27 = vld [vmem:[%s1986_s12 + $0xe8] sm:$0xf]  ;;  %v1180_v32 = vor.u32 %v1441_v19, %v1179_v18  ;;  %v1184_v36 = vor.u32 %v1439_v22, %v1181_v23 }
  0x83   : > { %857 = vmatpush.bf16.msra.mxu3 %v1360_v59  ;;  %831 = vmatpush.bf16.msra.mxu1 %v1356_v63  ;;  %v1470_v28 = vld [vmem:[%s1986_s12 + $0xf4] sm:$0xf0]  ;;  %v1468_v29 = vld [vmem:[%s1986_s12 + $0xec] sm:$0xf]  ;;  %v1301_v30 = vld [vmem:[%s1986_s12 + $0xf8] sm:$0xf0]  ;;  %v1312_v37 = vor.u32 %v1471_v24, %v1309_v26 }
  0x84   : > { %v1500_v31 = vld [vmem:[%s1986_s12 + $0x1ec] sm:$0xf]  ;;  %v1429_v33 = vld [vmem:[%s1986_s12 + $0x1f8] sm:$0xf0]  ;;  %v1307_v34 = vld [vmem:[%s1986_s12 + $0x100] sm:$0xf]  ;;  %v1300_v41 = vor.u32 %v1470_v28, %v1299_v27  ;;  %v1304_v42 = vor.u32 %v1468_v29, %v1301_v30 }
  0x85   : > { %819 = vmatpush.bf16.msra.mxu0 %v1212_v5  ;;  %v1473_v35 = vld [vmem:[%s1986_s12 + $0x10c] sm:$0xf0]  ;;  %v1427_v39 = vld [vmem:[%s1986_s12 + $0x1e8] sm:$0xf]  ;;  %v1502_v40 = vld [vmem:[%s1986_s12 + $0x1f4] sm:$0xf0]  ;;  %v1432_v45 = vor.u32 %v1500_v31, %v1429_v33 }
  0x86   : > { %845 = vmatpush.bf16.msra.mxu2 %v1216_v6  ;;  %v417_v38 = vld [vmem:[#allocation2] sm:$0xff]  ;;  %v415_v43 = vld [vmem:[%s1978_s21] sm:$0xff]  ;;  %v1308_v46 = vor.u32 %v1473_v35, %v1307_v34  ;;  %v1466_v47 = vld [vmem:[%s1986_s12 + $0xd4] sm:$0xf0]  ;;  %v1428_v51 = vor.u32 %v1502_v40, %v1427_v39 }
  0x87   : > { %858 = vmatpush.bf16.msra.mxu3 %v1344_v7  ;;  %832 = vmatpush.bf16.msra.mxu1 %v1340_v11  ;;  %v1283_v44 = vld [vmem:[%s1986_s12 + $0xc8] sm:$0xf]  ;;  %v1464_v48 = vld [vmem:[%s1986_s12 + $0xcc] sm:$0xf]  ;;  %v1285_v49 = vld [vmem:[%s1986_s12 + $0xd8] sm:$0xf0]  ;;  %v2085_v50 = vpack.c.bf16 %v417_v38, %v417_v38  ;;  %v2089_v54 = vpack.c.bf16 %v415_v43, %v415_v43 }
  0x88   : > { %v1496_v52 = vld [vmem:[%s1986_s12 + $0x1cc] sm:$0xf]  ;;  %v1413_v53 = vld [vmem:[%s1986_s12 + $0x1d8] sm:$0xf0]  ;;  %v1411_v55 = vld [vmem:[%s1986_s12 + $0x1c8] sm:$0xf]  ;;  %v1284_v57 = vor.u32 %v1466_v47, %v1283_v44  ;;  %v1288_v58 = vor.u32 %v1464_v48, %v1285_v49 }
  0x89   : > { %820 = vmatpush.bf16.msra.mxu0 %v1196_v17  ;;  %v1498_v56 = vld [vmem:[%s1986_s12 + $0x1d4] sm:$0xf0]  ;;  %v1267_v59 = vld [vmem:[%s1986_s12 + $0xa8] sm:$0xf]  ;;  %v1416_v60 = vor.u32 %v1496_v52, %v1413_v53  ;;  %v1460_v62 = vld [vmem:[%s1986_s12 + $0xac] sm:$0xf] }
  0x8a   : > { %846 = vmatpush.bf16.msra.mxu2 %v1200_v20  ;;  %v1462_v61 = vld [vmem:[%s1986_s12 + $0xb4] sm:$0xf0]  ;;  %v1269_v63 = vld [vmem:[%s1986_s12 + $0xb8] sm:$0xf0]  ;;  %v1412_v0 = vor.u32 %v1498_v56, %v1411_v55  ;;  %v1492_v1 = vld [vmem:[%s1986_s12 + $0x1ac] sm:$0xf] }
  0x8b   : > { %859 = vmatpush.bf16.msra.mxu3 %v1328_v21  ;;  %833 = vmatpush.bf16.msra.mxu1 %v1324_v25  ;;  %v1397_v2 = vld [vmem:[%s1986_s12 + $0x1b8] sm:$0xf0]  ;;  %v1395_v3 = vld [vmem:[%s1986_s12 + $0x1a8] sm:$0xf]  ;;  %v1494_v4 = vld [vmem:[%s1986_s12 + $0x1b4] sm:$0xf0]  ;;  %v1268_v5 = vor.u32 %v1462_v61, %v1267_v59  ;;  %v1272_v6 = vor.u32 %v1460_v62, %v1269_v63 }
  0x8c   : > { %v1251_v7 = vld [vmem:[%s1986_s12 + $0x88] sm:$0xf]  ;;  %v1400_v8 = vor.u32 %v1492_v1, %v1397_v2  ;;  %v1458_v9 = vld [vmem:[%s1986_s12 + $0x94] sm:$0xf0]  ;;  %v1456_v10 = vld [vmem:[%s1986_s12 + $0x8c] sm:$0xf]  ;;  %v1396_v12 = vor.u32 %v1494_v4, %v1395_v3 }
  0x8d   : > { %821 = vmatpush.bf16.msra.mxu0 %v1180_v32  ;;  %v1253_v11 = vld [vmem:[%s1986_s12 + $0x98] sm:$0xf0]  ;;  %v1488_v13 = vld [vmem:[%s1986_s12 + $0x18c] sm:$0xf]  ;;  %v1379_v15 = vld [vmem:[%s1986_s12 + $0x188] sm:$0xf]  ;;  %v1252_v17 = vor.u32 %v1458_v9, %v1251_v7 }
  0x8e   : > { %847 = vmatpush.bf16.msra.mxu2 %v1184_v36  ;;  %v1381_v14 = vld [vmem:[%s1986_s12 + $0x198] sm:$0xf0]  ;;  %v1490_v16 = vld [vmem:[%s1986_s12 + $0x194] sm:$0xf0]  ;;  %v1256_v18 = vor.u32 %v1456_v10, %v1253_v11  ;;  %v1235_v19 = vld [vmem:[%s1986_s12 + $0x68] sm:$0xf] }
  0x8f   : > { %860 = vmatpush.bf16.msra.mxu3 %v1312_v37  ;;  %834 = vmatpush.bf16.msra.mxu1 %v1308_v46  ;;  %v1384_v20 = vor.u32 %v1488_v13, %v1381_v14  ;;  %v1454_v21 = vld [vmem:[%s1986_s12 + $0x74] sm:$0xf0]  ;;  %v1452_v22 = vld [vmem:[%s1986_s12 + $0x6c] sm:$0xf]  ;;  %v1237_v23 = vld [vmem:[%s1986_s12 + $0x78] sm:$0xf0]  ;;  %v1380_v24 = vor.u32 %v1490_v16, %v1379_v15 }
  0x90   : > { %822 = vmatmul.bf16.vlgmr.msra.gmra.mxu0 %v2085_v50  ;;  %v1484_v25 = vld [vmem:[%s1986_s12 + $0x16c] sm:$0xf]  ;;  %v1365_v26 = vld [vmem:[%s1986_s12 + $0x178] sm:$0xf0]  ;;  %v1363_v27 = vld [vmem:[%s1986_s12 + $0x168] sm:$0xf]  ;;  %v1236_v29 = vor.u32 %v1454_v21, %v1235_v19  ;;  %v1240_v30 = vor.u32 %v1452_v22, %v1237_v23 }
  0x91   : > { %866 = vmatpush.bf16.msrb.mxu0 %v1300_v41  ;;  %848 = vmatmul.bf16.vlgmr.msra.gmra.mxu2 %v2085_v50  ;;  %v1486_v28 = vld [vmem:[%s1986_s12 + $0x174] sm:$0xf0]  ;;  %v1219_v31 = vld [vmem:[%s1986_s12 + $0x48] sm:$0xf]  ;;  %v1368_v32 = vor.u32 %v1484_v25, %v1365_v26  ;;  %v1448_v34 = vld [vmem:[%s1986_s12 + $0x4c] sm:$0xf] }
  0x92   : > { %892 = vmatpush.bf16.msrb.mxu2 %v1304_v42  ;;  %861 = vmatmul.bf16.vlgmr.msra.gmra.mxu3 %v2089_v54  ;;  %v1450_v33 = vld [vmem:[%s1986_s12 + $0x54] sm:$0xf0]  ;;  %v1221_v35 = vld [vmem:[%s1986_s12 + $0x58] sm:$0xf0]  ;;  %v1364_v36 = vor.u32 %v1486_v28, %v1363_v27  ;;  %v1480_v37 = vld [vmem:[%s1986_s12 + $0x14c] sm:$0xf] }
  0x93   : > { %905 = vmatpush.bf16.msrb.mxu3 %v1432_v45  ;;  %879 = vmatpush.bf16.msrb.mxu1 %v1428_v51  ;;  %v1349_v38 = vld [vmem:[%s1986_s12 + $0x158] sm:$0xf0]  ;;  %v1347_v39 = vld [vmem:[%s1986_s12 + $0x148] sm:$0xf]  ;;  %v1482_v40 = vld [vmem:[%s1986_s12 + $0x154] sm:$0xf0]  ;;  %v1220_v41 = vor.u32 %v1450_v33, %v1219_v31  ;;  %v1224_v42 = vor.u32 %v1448_v34, %v1221_v35 }
  0x94   : > { %835 = vmatmul.bf16.vlgmr.msra.gmra.mxu1 %v2089_v54  ;;  %v1203_v43 = vld [vmem:[%s1986_s12 + $0x28] sm:$0xf]  ;;  %v1352_v44 = vor.u32 %v1480_v37, %v1349_v38  ;;  %v1446_v45 = vld [vmem:[%s1986_s12 + $0x34] sm:$0xf0]  ;;  %v1444_v46 = vld [vmem:[%s1986_s12 + $0x2c] sm:$0xf]  ;;  %v1348_v48 = vor.u32 %v1482_v40, %v1347_v39 }
  0x95   : > { %867 = vmatpush.bf16.msrb.mxu0 %v1284_v57  ;;  %v1205_v47 = vld [vmem:[%s1986_s12 + $0x38] sm:$0xf0]  ;;  %v1476_v49 = vld [vmem:[%s1986_s12 + $0x12c] sm:$0xf]  ;;  %v1331_v52 = vld [vmem:[%s1986_s12 + $0x128] sm:$0xf]  ;;  %v1204_v55 = vor.u32 %v1446_v45, %v1203_v43 }
  0x96   : > { %893 = vmatpush.bf16.msrb.mxu2 %v1288_v58  ;;  %v1333_v51 = vld [vmem:[%s1986_s12 + $0x138] sm:$0xf0]  ;;  %v1478_v53 = vld [vmem:[%s1986_s12 + $0x134] sm:$0xf0]  ;;  %v1208_v56 = vor.u32 %v1444_v46, %v1205_v47  ;;  %v1187_v57 = vld [vmem:[%s1986_s12 + $0x8] sm:$0xf] }
  0x97   : > { %906 = vmatpush.bf16.msrb.mxu3 %v1416_v60  ;;  %880 = vmatpush.bf16.msrb.mxu1 %v1412_v0  ;;  %v1336_v58 = vor.u32 %v1476_v49, %v1333_v51  ;;  %v1442_v59 = vld [vmem:[%s1986_s12 + $0x14] sm:$0xf0]  ;;  %v1440_v60 = vld [vmem:[%s1986_s12 + $0xc] sm:$0xf]  ;;  %v1189_v61 = vld [vmem:[%s1986_s12 + $0x18] sm:$0xf0]  ;;  %v1332_v62 = vor.u32 %v1478_v53, %v1331_v52 }
  0x98   : > { %v1472_v63 = vld [vmem:[%s1986_s12 + $0x10c] sm:$0xf]  ;;  %v1317_v0 = vld [vmem:[%s1986_s12 + $0x118] sm:$0xf0]  ;;  %v1315_v1 = vld [vmem:[%s1986_s12 + $0x108] sm:$0xf]  ;;  %v1188_v3 = vor.u32 %v1442_v59, %v1187_v57  ;;  %v1192_v4 = vor.u32 %v1440_v60, %v1189_v61 }
  0x99   : > { %868 = vmatpush.bf16.msrb.mxu0 %v1268_v5  ;;  %v1474_v2 = vld [vmem:[%s1986_s12 + $0x114] sm:$0xf0]  ;;  %v1320_v5 = vor.u32 %v1472_v63, %v1317_v0  ;;  %v484_v7 = vld [vmem:[%s2004_s14] sm:$0xf] }
  0x9a   : > { %894 = vmatpush.bf16.msrb.mxu2 %v1272_v6  ;;  %v1316_v6 = vor.u32 %v1474_v2, %v1315_v1  ;;  %v487_v11 = vperm.slane %v484_v7, 1 }
  0x9b   : > { %907 = vmatpush.bf16.msrb.mxu3 %v1400_v8  ;;  %881 = vmatpush.bf16.msrb.mxu1 %v1396_v12  ;;  %v486_v8 = vperm.slane %v484_v7, 0 }
  0x9d   : > { %869 = vmatpush.bf16.msrb.mxu0 %v1252_v17 }
  0x9e   : > { %895 = vmatpush.bf16.msrb.mxu2 %v1256_v18 }
  0x9f   : > { %908 = vmatpush.bf16.msrb.mxu3 %v1384_v20  ;;  %882 = vmatpush.bf16.msrb.mxu1 %v1380_v24 }
  0xa1   : > { %870 = vmatpush.bf16.msrb.mxu0 %v1236_v29  ;;  %v488_v29 = vperm.slane %v484_v7, 2 }
  0xa2   : > { %896 = vmatpush.bf16.msrb.mxu2 %v1240_v30 }
  0xa3   : > { %909 = vmatpush.bf16.msrb.mxu3 %v1368_v32  ;;  %883 = vmatpush.bf16.msrb.mxu1 %v1364_v36 }
  0xa5   : > { %871 = vmatpush.bf16.msrb.mxu0 %v1220_v41 }
  0xa6   : > { %897 = vmatpush.bf16.msrb.mxu2 %v1224_v42 }
  0xa7   : > { %910 = vmatpush.bf16.msrb.mxu3 %v1352_v44  ;;  %884 = vmatpush.bf16.msrb.mxu1 %v1348_v48  ;;  %v489_v44 = vperm.slane %v484_v7, 3 }
  0xa9   : > { %872 = vmatpush.bf16.msrb.mxu0 %v1204_v55 }
  0xaa   : > { %898 = vmatpush.bf16.msrb.mxu2 %v1208_v56 }
  0xab   : > { %911 = vmatpush.bf16.msrb.mxu3 %v1336_v58  ;;  %885 = vmatpush.bf16.msrb.mxu1 %v1332_v62  ;;  %v416_v58 = vld [vmem:[%s1984_s27] sm:$0xff] }
  0xad   : > { %873 = vmatpush.bf16.msrb.mxu0 %v1188_v3 }
  0xae   : > { %899 = vmatpush.bf16.msrb.mxu2 %v1192_v4 }
  0xaf   : > { %912 = vmatpush.bf16.msrb.mxu3 %v1320_v5  ;;  %886 = vmatpush.bf16.msrb.mxu1 %v1316_v6 }
  0xb0   : > { %874 = vmatmul.bf16.vlgmr.msrb.gmra.mxu0 %v2085_v50 }
  0xb1   : > { %900 = vmatmul.bf16.vlgmr.msrb.gmra.mxu2 %v2085_v50 }
  0xb2   : > { %913 = vmatmul.bf16.vlgmr.msrb.gmra.mxu3 %v2089_v54  ;;  %887 = vmatmul.bf16.vlgmr.msrb.gmra.mxu1 %v2089_v54 }
 0x10d   : > { %v823_v9 = vpop.f32.mrf.mxu0 }
 0x10e   : > { %v824_v10 = vadd.f32 %v823_v9, %v486_v8 }
 0x111   : > { %v836_v12 = vpop.f32.mrf.mxu1 }
 0x112   : > { %v837_v13 = vadd.f32 %v836_v12, %v824_v10 }
 0x114   : > { %v849_v14 = vpop.f32.mrf.mxu2  ;;  %v1433_v15 = vmul.f32 -1.442695, %v837_v13 }
 0x115   : > { %v850_v16 = vadd.f32 %v849_v14, %v487_v11  ;;  %v862_v17 = vpop.f32.mrf.mxu3  ;;  %v825_v19 = vpop.f32.mrf.mxu0 }
 0x116   : > { %1570 = vpow2.f32 %v1433_v15 }
 0x117   : > { %v863_v18 = vadd.f32 %v862_v17, %v850_v16 }
 0x119   : > { %v1434_v20 = vmul.f32 -1.442695, %v863_v18  ;;  %v838_v50 = vpop.f32.mrf.mxu1 }
 0x11b   : > { %1572 = vpow2.f32 %v1434_v20 }
 0x11c   : > { %v1571_v21 = vpop.eup %1570  ;;  %v851_v22 = vpop.f32.mrf.mxu2 }
 0x11d   : > { %v921_v54 = vadd.f32 1.0, %v1571_v21  ;;  %v864_v23 = vpop.f32.mrf.mxu3 }
 0x11f   : > { %1574 = vrcp.f32 %v921_v54  ;;  %vm927_vm0 = vweird.f32 %v921_v54  ;;  %v931_v34 = vand.u32 2147483647, %v921_v54  ;;  %v933_v37 = vand.u32 2147483648, %v921_v54 }
 0x121   : > { %v1573_v24 = vpop.eup %1572  ;;  %v934_v48 = vor.u32 1.1754944e-38, %v933_v37  ;;  %vm932_vm6 = vcmp.eq.f32.partialorder %v931_v34, 8.507059e+37 }
 0x122   : > { %v940_v25 = vadd.f32 1.0, %v1573_v24 }
 0x124   : > { %1576 = vrcp.f32 %v940_v25  ;;  %vm946_vm2 = vweird.f32 %v940_v25  ;;  %v952_v35 = vand.u32 2147483648, %v940_v25  ;;  %v950_v41 = vand.u32 2147483647, %v940_v25 }
 0x125   : > { %v1575_v26 = vpop.eup %1574 }
 0x126   : > { %v923_v27 = vmul.f32 %v1575_v26, %v921_v54  ;;  %vm928_vm1 = vweird.f32 %v1575_v26  ;;  %v953_v47 = vor.u32 1.1754944e-38, %v952_v35  ;;  %vm951_vm7 = vcmp.eq.f32.partialorder %v950_v41, 8.507059e+37 }
 0x127   : > { %vm2150_vm4 = vmor %vm927_vm0, %vm928_vm1 }
 0x128   : > { %v924_v28 = vsub.f32 1.0, %v923_v27 }
 0x12a   : > { %v1577_v30 = vpop.eup %1576  ;;  %v925_v31 = vmul.f32 %v1575_v26, %v924_v28 }
 0x12b   : > { %v942_v32 = vmul.f32 %v1577_v30, %v940_v25  ;;  %vm947_vm3 = vweird.f32 %v1577_v30 }
 0x12c   : > { %v926_v40 = vadd.f32 %v1575_v26, %v925_v31  ;;  %vm2154_vm5 = vmor %vm946_vm2, %vm947_vm3 }
 0x12d   : > { %v875_v33 = vpop.f32.mrf.mxu0  ;;  %v943_v38 = vsub.f32 1.0, %v942_v32 }
 0x12e   : > { %v876_v36 = vadd.f32 %v875_v33, %v488_v29  ;;  %v930_v49 = vsel %vm2150_vm4, %v1575_v26, %v926_v40 }
 0x12f   : > { %v888_v39 = vpop.f32.mrf.mxu1  ;;  %v944_v45 = vmul.f32 %v1577_v30, %v943_v38  ;;  %v935_v59 = vsel %vm932_vm6, %v934_v48, %v930_v49 }
 0x130   : > { %v889_v42 = vadd.f32 %v888_v39, %v876_v36 }
 0x131   : > { %v945_v51 = vadd.f32 %v1577_v30, %v944_v45 }
 0x132   : > { %1578 = vtanh.f32 %v889_v42 }
 0x133   : > { %v949_v56 = vsel %vm2154_vm5, %v1577_v30, %v945_v51 }
 0x134   : > { %v901_v52 = vpop.f32.mrf.mxu2  ;;  %v954_v60 = vsel %vm951_vm7, %v953_v47, %v949_v56 }
 0x135   : > { %v902_v53 = vadd.f32 %v901_v52, %v489_v44  ;;  %v914_v55 = vpop.f32.mrf.mxu3  ;;  %v877_v57 = vpop.f32.mrf.mxu0  ;;  %v976_v1 = vmul.f32 %v954_v60, %v416_v58 }
 0x137   : > { %v915_v61 = vadd.f32 %v914_v55, %v902_v53  ;;  %v890_v62 = vpop.f32.mrf.mxu1 }
 0x138   : > { %v1579_v63 = vpop.eup %1578 }
 0x139   : > { %v1435_v0 = vmul.f32 -1.442695, %v915_v61  ;;  %v977_v2 = vmul.f32 %v1579_v63, %v935_v59 }
 0x13b   : > { %1580 = vpow2.f32 %v1435_v0  ;;  %v978_v3 = vadd.f32 %v977_v2, %v976_v1 }
 0x13c   : > { %v903_v4 = vpop.f32.mrf.mxu2 }
 0x13d   : > { %v916_v5 = vpop.f32.mrf.mxu3  ;;  %982 = vst [vmem:[%s2002_s24] sm:$0xff] %v978_v3 }
 0x141   : > { %v1581_v6 = vpop.eup %1580 }
 0x142   : > { %v960_v7 = vadd.f32 1.0, %v1581_v6 }
 0x144   : > { %1582 = vrcp.f32 %v960_v7  ;;  %v972_v11 = vand.u32 2147483648, %v960_v7  ;;  %v970_v13 = vand.u32 2147483647, %v960_v7  ;;  %vm966_vm9 = vweird.f32 %v960_v7 }
 0x145   : > { %1584 = vtanh.f32 %v978_v3 }
 0x146   : > { %v973_v15 = vor.u32 1.1754944e-38, %v972_v11  ;;  %vm971_vm11 = vcmp.eq.f32.partialorder %v970_v13, 8.507059e+37 }
 0x14a   : > { %v1583_v8 = vpop.eup %1582 }
 0x14b   : > { %v962_v9 = vmul.f32 %v1583_v8, %v960_v7  ;;  %vm967_vm8 = vweird.f32 %v1583_v8  ;;  %v1585_v17 = vpop.eup %1584 }
 0x14c   : > { %vm968_vm10 = vmor %vm966_vm9, %vm967_vm8 }
 0x14d   : > { %v963_v10 = vsub.f32 1.0, %v962_v9 }
 0x14f   : > { %v964_v12 = vmul.f32 %v1583_v8, %v963_v10 }
 0x151   : > { %v965_v14 = vadd.f32 %v1583_v8, %v964_v12 }
 0x153   : > { %v969_v16 = vsel %vm968_vm10, %v1583_v8, %v965_v14 }
 0x154   : > { %v974_v18 = vsel %vm971_vm11, %v973_v15, %v969_v16 }
 0x155   : > { %v980_v19 = vmul.f32 %v1585_v17, %v974_v18 }
 0x157   : > { %981 = vst [vmem:[%s1997_s1] sm:$0xff] %v980_v19 }
 0x158   : > { %983 = vst [vmem:[#allocation2] sm:$0xff] %v980_v19 }
 0x159 PF: > { %p21_p7 = scmp.ge.s32.totalorder %s1839_s25, 5   ;;  %s2200_s21 = smov %s1770_s22 }
 0x15a   : > { %s2201_s22 = smov %s1774_s23  ;;  %s2202_s23 = smov %s1849_s28 }
 0x15b   : > { %s2203_s24 = smov %s1839_s25  ;;  %23 = sbr.rel (!%p21_p7) target bundleno = 9 (0x9), region = 136 }
 0x160   :  { %1017 = vsyncpa [#allocation4], 1 }
 0x161   :  { %1019 = vsyncpa [#allocation4 + $0x1], 1 }
 0x162   :  { %1020 = vsyncpa [#allocation6], 1 }
 0x163   :  { %1022 = vsyncpa [#allocation6 + $0x1], 1 }
 0x164   :  { %1023 = vsyncpa [#allocation9], 1 }
 0x165   :  { %1025 = vsyncpa [#allocation9 + $0x1], 1 }

</bundles_post_ra>
